<compile_context>
chip_gen: v5e
topology: v5e:2x2
jax: 0.10.0
libtpu: 0.0.40
codegen_flags: <defaults>
</compile_context>

<pallas_src>
import jax
import jax.numpy as jnp
from jax.experimental import pallas as pl
from jax.experimental.pallas import tpu as pltpu


# ----------------------------------------------------------------------------
# Pallas kernel: FM interaction + MLP + final sigmoid (batch on lanes)
# ----------------------------------------------------------------------------
def deepfm_kernel(emb_ref, lin_ref, w1_ref, b1_ref, w2_ref, b2_ref, w3_ref,
                  b3_ref, out_ref):
    # emb_ref : (2D, T) bf16   rows [0:D) = user embedding, [D:2D) = item emb
    # lin_ref : (1, T)  f32    first-order linear term (incl. its bias)
    # w1_ref  : (H1, 2D) bf16  ; b1_ref: (H1, 1) f32
    # w2_ref  : (H2, H1) bf16  ; b2_ref: (H2, 1) f32
    # w3_ref  : (H2, 1)  f32   ; b3_ref: (1, 1) f32 in SMEM
    # out_ref : (1, T)   f32
    D = emb_ref.shape[0] // 2
    x = emb_ref[...]                                   # (2D, T) bf16

    # ---- FactorizationMachine ------------------------------------------
    # 2-field closed form: 0.5*((u+v)^2 - u^2 - v^2) == sum_d u_d * v_d.
    # (Exact only for exactly 2 fields; revisit if the field count changes.)
    u = x[:D, :].astype(jnp.float32)                   # (D, T)
    v = x[D:, :].astype(jnp.float32)                   # (D, T)
    fm_term = jnp.sum(u * v, axis=0, keepdims=True)    # (1, T)

    # ---- MLP: two MXU matmuls (bf16 in, f32 acc) + ReLU ------------------
    h = jnp.dot(w1_ref[...], x,
                preferred_element_type=jnp.float32) + b1_ref[...]   # (H1, T)
    h = jnp.maximum(h, 0.0)
    h = jnp.dot(w2_ref[...], h.astype(jnp.bfloat16),
                preferred_element_type=jnp.float32) + b2_ref[...]   # (H2, T)
    h = jnp.maximum(h, 0.0)
    # Final 1-output Linear as a VPU multiply + reduce (a 1-column matmul
    # would waste the 128/256-wide MXU).
    mlp_term = jnp.sum(h * w3_ref[...], axis=0, keepdims=True) + b3_ref[0, 0]
    # TODO(synk): dropout layers are identity in eval mode, so omitted.

    logits = lin_ref[...] + fm_term + mlp_term         # (1, T) lane-dense
    out_ref[...] = jax.nn.sigmoid(logits)


def deepfm_pallas(emb_t, lin_row, w1t, b1, w2t, b2, w3, b3, *, tile_b=512):
    """Fused FM + MLP + sigmoid.  emb_t: (2D, B) bf16, lin_row: (1, B) f32.
    Returns (B,) predicted ratings (f32)."""
    two_d, B = emb_t.shape
    H1 = w1t.shape[0]
    H2 = w2t.shape[0]

    # Pick a lane (batch) tile.  Large B: fixed lane-dense tile (multiple of
    # 128) so blocks pipeline / shard across cores; small B: one full block.
    if B >= tile_b:
        tb = tile_b
    else:
        tb = max(8, -(-B // 8) * 8)
    b_pad = -(-B // tb) * tb
    if b_pad != B:
        emb_t = jnp.pad(emb_t, ((0, 0), (0, b_pad - B)))
        lin_row = jnp.pad(lin_row, ((0, 0), (0, b_pad - B)))

    grid = (b_pad // tb,)
    out = pl.pallas_call(
        deepfm_kernel,
        out_shape=jax.ShapeDtypeStruct((1, b_pad), jnp.float32),
        grid_spec=pltpu.PrefetchScalarGridSpec(
            num_scalar_prefetch=0,
            grid=grid,
            in_specs=[
                # per-batch-tile streams
                pl.BlockSpec((two_d, tb), lambda i: (0, i)),
                pl.BlockSpec((1, tb), lambda i: (0, i)),
                # VMEM-resident MLP parameters (same block every step)
                pl.BlockSpec((H1, two_d), lambda i: (0, 0)),
                pl.BlockSpec((H1, 1), lambda i: (0, 0)),
                pl.BlockSpec((H2, H1), lambda i: (0, 0)),
                pl.BlockSpec((H2, 1), lambda i: (0, 0)),
                pl.BlockSpec((H2, 1), lambda i: (0, 0)),
                # scalar bias in SMEM
                pl.BlockSpec(memory_space=pltpu.MemorySpace.SMEM),
            ],
            out_specs=pl.BlockSpec((1, tb), lambda i: (0, i)),
        ),
        compiler_params=pltpu.CompilerParams(
            dimension_semantics=("parallel",),        # megacore: split batch tiles
            vmem_limit_bytes=32 * 1024 * 1024,        # explicit; fits v7x's budget
        ),
    )(emb_t, lin_row, w1t, b1, w2t, b2, w3, b3)
    return out[0, :B]


# ----------------------------------------------------------------------------
# Parameters (kernel layout: weights as (out, in); MXU operands in bf16)
# ----------------------------------------------------------------------------
class DeepFMParams:
    def __init__(self, key, num_items, embed_dim, mlp_dims):
        assert len(mlp_dims) == 2, "this setup fuses a 2-hidden-layer MLP"
        k = jax.random.split(key, 8)
        self.embedding = 0.1 * jax.random.normal(
            k[0], (num_items, embed_dim), jnp.float32)          # shared table
        self.lin_w = 0.1 * jax.random.normal(
            k[1], (num_items, 1), jnp.float32)                  # FeaturesLinear weight
        self.lin_b = 0.1 * jax.random.normal(k[2], (1,), jnp.float32)
        in_dim = 2 * embed_dim
        H1, H2 = mlp_dims
        self.w1t = (0.1 * jax.random.normal(
            k[3], (H1, in_dim), jnp.float32)).astype(jnp.bfloat16)   # (out, in)
        self.b1 = 0.1 * jax.random.normal(k[4], (H1, 1), jnp.float32)
        self.w2t = (0.1 * jax.random.normal(
            k[5], (H2, H1), jnp.float32)).astype(jnp.bfloat16)
        self.b2 = 0.1 * jax.random.normal(k[6], (H2, 1), jnp.float32)
        self.w3 = 0.1 * jax.random.normal(k[7], (H2, 1), jnp.float32)
        self.b3 = jnp.zeros((1, 1), jnp.float32)


# ----------------------------------------------------------------------------
# Glue: embedding / linear gathers (plain JAX) + kernel call
# ----------------------------------------------------------------------------
def deepfm_forward(params, feature_ids, feature_ratings, item_ids):
    """features = (user feature ids (B,F), their ratings (B,F), item ids (B,))."""
    E = params.embedding
    user_emb = jnp.sum(feature_ratings[..., None] * E[feature_ids], axis=1)  # (B,D)
    item_emb = E[item_ids]                                                   # (B,D)
    # flatten(1,2) order = [user | item]; transpose so batch sits on lanes.
    emb_t = jnp.concatenate([user_emb, item_emb], axis=-1).T.astype(jnp.bfloat16)  # (2D,B)

    # first-order linear term (+ its bias, folded here)
    lin = (jnp.sum(feature_ratings[..., None] * params.lin_w[feature_ids], axis=1)
           + params.lin_w[item_ids] + params.lin_b)                          # (B,1)
    lin_row = lin.T.astype(jnp.float32)                                      # (1,B)

    return deepfm_pallas(emb_t, lin_row, params.w1t, params.b1,
                         params.w2t, params.b2, params.w3, params.b3)


# ----------------------------------------------------------------------------
# Pure-JAX reference (same bf16 precision policy, batch-row layout)
# ----------------------------------------------------------------------------
def deepfm_reference(params, feature_ids, feature_ratings, item_ids):
    E = params.embedding
    user_emb = jnp.sum(feature_ratings[..., None] * E[feature_ids], axis=1)
    item_emb = E[item_ids]
    lin = (jnp.sum(feature_ratings[..., None] * params.lin_w[feature_ids], axis=1)
           + params.lin_w[item_ids] + params.lin_b)                          # (B,1)

    u = user_emb.astype(jnp.bfloat16).astype(jnp.float32)
    v = item_emb.astype(jnp.bfloat16).astype(jnp.float32)
    fm = jnp.sum(u * v, axis=-1, keepdims=True)                              # (B,1)

    x = jnp.concatenate([user_emb, item_emb], axis=-1).astype(jnp.bfloat16)  # (B,2D)
    h = jnp.dot(x, params.w1t.T, preferred_element_type=jnp.float32) + params.b1[:, 0]
    h = jnp.maximum(h, 0.0)
    h = jnp.dot(h.astype(jnp.bfloat16), params.w2t.T,
                preferred_element_type=jnp.float32) + params.b2[:, 0]
    h = jnp.maximum(h, 0.0)
    mlp = jnp.sum(h * params.w3[:, 0], axis=-1, keepdims=True) + params.b3[0, 0]
    return jax.nn.sigmoid(lin + fm + mlp)[:, 0]


if __name__ == "__main__":
    num_items = 100
    embed_dim = 16
    mlp_dims = [32, 16]
    B, F = 8, 4          # batch of users, fixed number of user features each

    key = jax.random.PRNGKey(0)
    kp, kf, kr, ki = jax.random.split(key, 4)
    params = DeepFMParams(kp, num_items, embed_dim, mlp_dims)

    feature_ids = jax.random.randint(kf, (B, F), 0, num_items, dtype=jnp.int32)
    feature_ratings = jax.random.uniform(kr, (B, F), jnp.float32, 0.5, 5.0)
    item_ids = jax.random.randint(ki, (B,), 0, num_items, dtype=jnp.int32)

    out = deepfm_forward(params, feature_ids, feature_ratings, item_ids)
    out = jax.block_until_ready(out)

    ref = deepfm_reference(params, feature_ids, feature_ratings, item_ids)
    assert out.shape == (B,)
    assert jnp.allclose(out, ref, atol=2e-3, rtol=2e-3), (out, ref)
    print("KERNEL_OK")
</pallas_src>

<mosaic_0001>
module attributes {stable_mosaic.version = 11 : i64} {
  func.func @deepfm_kernel(%arg0: i32, %arg1: memref<32x8xbf16, #tpu.memory_space<vmem>>, %arg2: memref<1x8xf32, #tpu.memory_space<vmem>>, %arg3: memref<32x32xbf16, #tpu.memory_space<vmem>>, %arg4: memref<32x1xf32, #tpu.memory_space<vmem>>, %arg5: memref<16x32xbf16, #tpu.memory_space<vmem>>, %arg6: memref<16x1xf32, #tpu.memory_space<vmem>>, %arg7: memref<16x1xf32, #tpu.memory_space<vmem>>, %arg8: memref<1x1xf32, #tpu.memory_space<smem>>, %arg9: memref<1x8xf32, #tpu.memory_space<vmem>>) attributes {dimension_semantics = [#tpu.dimension_semantics<parallel>], iteration_bounds = array<i64: 1>, scalar_prefetch = 0 : i64, scratch_operands = 0 : i64, tpu.core_type = #tpu.core_type<tc>, window_params = [{transform_indices = @transform_0, window_bounds = array<i64: 32, 8>}, {transform_indices = @transform_1, window_bounds = array<i64: 1, 8>}, {pipeline_mode = #tpu.pipeline_mode<synchronous>, transform_indices = @transform_2, window_bounds = array<i64: 32, 32>}, {pipeline_mode = #tpu.pipeline_mode<synchronous>, transform_indices = @transform_3, window_bounds = array<i64: 32, 1>}, {pipeline_mode = #tpu.pipeline_mode<synchronous>, transform_indices = @transform_4, window_bounds = array<i64: 16, 32>}, {pipeline_mode = #tpu.pipeline_mode<synchronous>, transform_indices = @transform_5, window_bounds = array<i64: 16, 1>}, {pipeline_mode = #tpu.pipeline_mode<synchronous>, transform_indices = @transform_6, window_bounds = array<i64: 16, 1>}, {transform_indices = @transform_7, window_bounds = array<i64: 1, 1>}, {transform_indices = @transform_8, window_bounds = array<i64: 1, 8>}]} {
    %c0 = arith.constant 0 : index
    %c0_0 = arith.constant 0 : index
    %0 = vector.load %arg1[%c0, %c0_0] : memref<32x8xbf16, #tpu.memory_space<vmem>>, vector<32x8xbf16>
    %1 = vector.extract_strided_slice %0 {offsets = [0, 0], sizes = [16, 8], strides = [1, 1]} : vector<32x8xbf16> to vector<16x8xbf16>
    %2 = arith.extf %1 : vector<16x8xbf16> to vector<16x8xf32>
    %3 = vector.extract_strided_slice %0 {offsets = [16, 0], sizes = [16, 8], strides = [1, 1]} : vector<32x8xbf16> to vector<16x8xbf16>
    %4 = arith.extf %3 : vector<16x8xbf16> to vector<16x8xf32>
    %5 = arith.mulf %2, %4 : vector<16x8xf32>
    %cst = arith.constant dense<0.000000e+00> : vector<8xf32>
    %6 = vector.multi_reduction <add>, %5, %cst [0] : vector<16x8xf32> to vector<8xf32>
    %7 = vector.shape_cast %6 : vector<8xf32> to vector<1x8xf32>
    %c0_1 = arith.constant 0 : index
    %c0_2 = arith.constant 0 : index
    %8 = vector.load %arg3[%c0_1, %c0_2] : memref<32x32xbf16, #tpu.memory_space<vmem>>, vector<32x32xbf16>
    %cst_3 = arith.constant dense<0.000000e+00> : vector<32x8xf32>
    %9 = tpu.matmul %8, %0, %cst_3 {dimension_numbers = #tpu.dot_dimension_numbers<[1], [0], [0], [1], [0, 0, 1, 1], [], []>} : vector<32x32xbf16>, vector<32x8xbf16>, vector<32x8xf32> -> vector<32x8xf32>
    %c0_4 = arith.constant 0 : index
    %c0_5 = arith.constant 0 : index
    %10 = vector.load %arg4[%c0_4, %c0_5] : memref<32x1xf32, #tpu.memory_space<vmem>>, vector<32x1xf32>
    %11 = vector.broadcast %10 : vector<32x1xf32> to vector<32x8xf32>
    %12 = arith.addf %9, %11 : vector<32x8xf32>
    %cst_6 = arith.constant 0.000000e+00 : f32
    %13 = vector.broadcast %cst_6 : f32 to vector<32x8xf32>
    %14 = arith.maximumf %12, %13 : vector<32x8xf32>
    %c0_7 = arith.constant 0 : index
    %c0_8 = arith.constant 0 : index
    %15 = vector.load %arg5[%c0_7, %c0_8] : memref<16x32xbf16, #tpu.memory_space<vmem>>, vector<16x32xbf16>
    %16 = arith.truncf %14 : vector<32x8xf32> to vector<32x8xbf16>
    %cst_9 = arith.constant dense<0.000000e+00> : vector<16x8xf32>
    %17 = tpu.matmul %15, %16, %cst_9 {dimension_numbers = #tpu.dot_dimension_numbers<[1], [0], [0], [1], [0, 0, 1, 1], [], []>} : vector<16x32xbf16>, vector<32x8xbf16>, vector<16x8xf32> -> vector<16x8xf32>
    %c0_10 = arith.constant 0 : index
    %c0_11 = arith.constant 0 : index
    %18 = vector.load %arg6[%c0_10, %c0_11] : memref<16x1xf32, #tpu.memory_space<vmem>>, vector<16x1xf32>
    %19 = vector.broadcast %18 : vector<16x1xf32> to vector<16x8xf32>
    %20 = arith.addf %17, %19 : vector<16x8xf32>
    %cst_12 = arith.constant 0.000000e+00 : f32
    %21 = vector.broadcast %cst_12 : f32 to vector<16x8xf32>
    %22 = arith.maximumf %20, %21 : vector<16x8xf32>
    %c0_13 = arith.constant 0 : index
    %c0_14 = arith.constant 0 : index
    %23 = vector.load %arg7[%c0_13, %c0_14] : memref<16x1xf32, #tpu.memory_space<vmem>>, vector<16x1xf32>
    %24 = vector.broadcast %23 : vector<16x1xf32> to vector<16x8xf32>
    %25 = arith.mulf %22, %24 : vector<16x8xf32>
    %cst_15 = arith.constant dense<0.000000e+00> : vector<8xf32>
    %26 = vector.multi_reduction <add>, %25, %cst_15 [0] : vector<16x8xf32> to vector<8xf32>
    %27 = vector.shape_cast %26 : vector<8xf32> to vector<1x8xf32>
    %c0_16 = arith.constant 0 : index
    %c0_17 = arith.constant 0 : index
    %28 = memref.load %arg8[%c0_16, %c0_17] : memref<1x1xf32, #tpu.memory_space<smem>>
    %29 = vector.broadcast %28 : f32 to vector<1x8xf32>
    %30 = arith.addf %27, %29 : vector<1x8xf32>
    %c0_18 = arith.constant 0 : index
    %c0_19 = arith.constant 0 : index
    %31 = vector.load %arg2[%c0_18, %c0_19] : memref<1x8xf32, #tpu.memory_space<vmem>>, vector<1x8xf32>
    %32 = arith.addf %31, %7 : vector<1x8xf32>
    %33 = arith.addf %32, %30 : vector<1x8xf32>
    %34 = arith.negf %33 : vector<1x8xf32>
    %35 = math.exp %34 : vector<1x8xf32>
    %cst_20 = arith.constant 1.000000e+00 : f32
    %36 = vector.broadcast %cst_20 : f32 to vector<1x8xf32>
    %37 = arith.addf %36, %35 : vector<1x8xf32>
    %38 = arith.divf %36, %37 : vector<1x8xf32>
    %c0_21 = arith.constant 0 : index
    %c0_22 = arith.constant 0 : index
    %39 = vector.load %arg9[%c0_21, %c0_22] : memref<1x8xf32, #tpu.memory_space<vmem>>, vector<1x8xf32>
    tpu.vector_store %arg9[%c0_21, %c0_22], %38 {strides = array<i32>} : memref<1x8xf32, #tpu.memory_space<vmem>>, vector<1x8xf32>,
    return
  }
  func.func @transform_0(%arg0: i32) -> (i32, i32) {
    %c0_i32 = arith.constant 0 : i32
    %c0_i32_0 = arith.constant 0 : i32
    return %c0_i32, %arg0 : i32, i32
  }
  func.func @transform_1(%arg0: i32) -> (i32, i32) {
    %c0_i32 = arith.constant 0 : i32
    %c0_i32_0 = arith.constant 0 : i32
    return %c0_i32, %arg0 : i32, i32
  }
  func.func @transform_2(%arg0: i32) -> (i32, i32) {
    %c0_i32 = arith.constant 0 : i32
    %c0_i32_0 = arith.constant 0 : i32
    %c0_i32_1 = arith.constant 0 : i32
    return %c0_i32, %c0_i32_0 : i32, i32
  }
  func.func @transform_3(%arg0: i32) -> (i32, i32) {
    %c0_i32 = arith.constant 0 : i32
    %c0_i32_0 = arith.constant 0 : i32
    %c0_i32_1 = arith.constant 0 : i32
    return %c0_i32, %c0_i32_0 : i32, i32
  }
  func.func @transform_4(%arg0: i32) -> (i32, i32) {
    %c0_i32 = arith.constant 0 : i32
    %c0_i32_0 = arith.constant 0 : i32
    %c0_i32_1 = arith.constant 0 : i32
    return %c0_i32, %c0_i32_0 : i32, i32
  }
  func.func @transform_5(%arg0: i32) -> (i32, i32) {
    %c0_i32 = arith.constant 0 : i32
    %c0_i32_0 = arith.constant 0 : i32
    %c0_i32_1 = arith.constant 0 : i32
    return %c0_i32, %c0_i32_0 : i32, i32
  }
  func.func @transform_6(%arg0: i32) -> (i32, i32) {
    %c0_i32 = arith.constant 0 : i32
    %c0_i32_0 = arith.constant 0 : i32
    %c0_i32_1 = arith.constant 0 : i32
    return %c0_i32, %c0_i32_0 : i32, i32
  }
  func.func @transform_7(%arg0: i32) -> (i32, i32) {
    %c0_i32 = arith.constant 0 : i32
    %c0_i32_0 = arith.constant 0 : i32
    %c0_i32_1 = arith.constant 0 : i32
    return %c0_i32, %c0_i32_0 : i32, i32
  }
  func.func @transform_8(%arg0: i32) -> (i32, i32) {
    %c0_i32 = arith.constant 0 : i32
    %c0_i32_0 = arith.constant 0 : i32
    return %c0_i32, %arg0 : i32, i32
  }
}

</mosaic_0001>

<bundles_post_ra>
// kernel: tpu_custom_call.1
= control target key start
LH: loop header
LB: loop body
LE: loop exit
PB: predicated region body
PF: predicated region fallthrough
CT: control target
= control target key end

     0   :  { %v304_v1 = vmov 0   ;;  %s412_s0 = inlined_call_operand.vmem [shape: bf16[32,8], index: 0, kind: input, shape index: {}]   ;;  %s413_s1 = inlined_call_operand.vmem [shape: f32[1,8], index: 1, kind: input, shape index: {}]   ;;  %s414_s2 = inlined_call_operand.vmem [shape: bf16[32,32], index: 2, kind: input, shape index: {}]   ;;  %s415_s3 = inlined_call_operand.vmem [shape: f32[32,1], index: 3, kind: input, shape index: {}]   ;;  %s416_s4 = inlined_call_operand.vmem [shape: bf16[16,32], index: 4, kind: input, shape index: {}]   ;;  %s417_s5 = inlined_call_operand.vmem [shape: f32[16,1], index: 5, kind: input, shape index: {}]   ;;  %s418_s6 = inlined_call_operand.vmem [shape: f32[16,1], index: 6, kind: input, shape index: {}]   ;;  %s419_s7 = inlined_call_operand.<no memory space> [shape: f32[1,1], index: 7, kind: input, shape index: {}]   ;;  %s420_s8 = inlined_call_operand.hbm [shape: f32[1,8], index: 8, kind: output, shape index: {}]  }
   0x1   :  { %v263_v0 = vld [vmem:[%s412_s0 + $0x8] sm:$0xff]  ;;  %271 = vset.pattern.permute.xlu0 %v304_v1  ;;  %v58_v2 = vld [vmem:[%s415_s3 + $0x10] sm:$0xff]  ;;  %272 = vset.pattern.permute.xlu1 %v304_v1  ;;  %v56_v3 = vld [vmem:[%s415_s3] sm:$0xff] }
   0x2   :  { %267 = vmatpush.bf16.msra.mxu2 %v263_v0  ;;  %115 = vmatpush.bf16.msra.mxu0 %v263_v0  ;;  %v262_v4 = vld [vmem:[%s412_s0] sm:$0xff] }
   0x3   :  { %72 = vperm.xlu0 %271, %v58_v2   ;;  %62 = vperm.xlu1 %272, %v56_v3  }
   0x4   :  { %14 = vsyncpa [#allocation4], 0  ;;  %273 = vset.pattern.permute.xlu2 %v304_v1  ;;  %v265_v5 = vld [vmem:[%s414_s2 + $0x8] sm:$0xff]  ;;  %v264_v6 = vld [vmem:[%s414_s2] sm:$0xff]  ;;  %vm102_vm0 = vcmask 261120   ;;  %vm42_vm1 = vcmask 64512  }
   0x5   :  { %v59_v7 = vld [vmem:[%s415_s3 + $0x18] sm:$0xff]  ;;  %v57_v8 = vld [vmem:[%s415_s3 + $0x8] sm:$0xff]  ;;  %v172_v9 = vld [vmem:[%s418_s6] sm:$0xff]  ;;  %s229_s13 = sshll.u32 %s420_s8, 4  ;;  %vm220_vm5 = vcmask 57344   ;;  %s230_s13 = int_to_ptr.hbm [resolvable:$true] %s229_s13 }
   0x6   :  { %268 = vmatpush.bf16.msra.mxu2 %v262_v4  ;;  %116 = vmatpush.bf16.msra.mxu0 %v262_v4  ;;  %v173_v10 = vld [vmem:[%s418_s6 + $0x8] sm:$0xff]  ;;  %v136_v11 = vld [vmem:[%s417_s5] sm:$0xff] }
   0x7   :  { %140 = vperm.xlu2 %273, %v136_v11   ;;  %v137_v13 = vld [vmem:[%s417_s5 + $0x8] sm:$0xff]  ;;  %v266_v31 = vld [vmem:[%s416_s4] sm:$0xff] }
   0x8   :  { %v32_v32 = vld [vmem:[%s412_s0] sm:$0xff]   ;;  %v34_v33 = vld [vmem:[%s412_s0 + $0x8] sm:$0xff]  }
   0x9   :  { %255 = vmatmul.msk.bf16.vlgmr.msra.gmra.mxu2 %vm102_vm0, %v265_v5  ;;  %254 = vmatmul.msk.bf16.vlgmr.msra.gmra.mxu0 %vm102_vm0, %v264_v6  ;;  %v36_v34 = vunpack.c.l.bf16 %v32_v32  ;;  %v37_v35 = vunpack.c.h.bf16 %v32_v32  ;;  %v38_v36 = vunpack.c.l.bf16 %v34_v33  ;;  %v39_v37 = vunpack.c.h.bf16 %v34_v33  ;;  %v198_v4 = vld [vmem:[%s413_s1] sm:$0x1]  ;;  %s305_s1 = smov [#allocation3]  }
   0xa   :  { %v196_v6 = vstv %s419_s7  ;;  %s227_s11 = sshll.u32 %s305_s1, 4  ;;  %s228_s11 = int_to_ptr.vmem [resolvable:$true] %s227_s11 }
   0xb   :  { %77 = vperm.xlu0 %271, %v59_v7   ;;  %67 = vperm.xlu1 %272, %v57_v8   ;;  %v40_v38 = vmul.f32 %v38_v36, %v36_v34  ;;  %v41_v39 = vmul.f32 %v39_v37, %v37_v35 }
   0xd   :  { %v43_v40 = vsel %vm42_vm1, %v40_v38, 0.0  ;;  %v44_v41 = vsel %vm42_vm1, %v41_v39, 0.0 }
   0xe   :  { %v45_v43 = vadd.f32 %v44_v41, %v43_v40 }
   0xf   :  { %145 = vperm.xlu2 %273, %v137_v13  }
  0x10   :  { %v46_v46 = vrot.slane %v45_v43, 4 }
  0x12   :  { %v47_v49 = vadd.f32 %v46_v46, %v45_v43 }
  0x13   :  { %176 = vperm.xlu0 %271, %v172_v9   ;;  %181 = vperm.xlu1 %272, %v173_v10  }
  0x14   :  { %v48_v56 = vrot.slane %v47_v49, 2 }
  0x16   :  { %v49_v60 = vadd.f32 %v48_v56, %v47_v49 }
  0x18   :  { %v50_v63 = vrot.slane %v49_v60, 1 }
  0x1a   :  { %v51_v2 = vadd.f32 %v50_v63, %v49_v60 }
  0x1c   :  { %v199_v8 = vadd.f32 %v198_v4, %v51_v2 }
  0x61   :  { %v141_v42 = vpop.permute.xlu2 %140 }
  0x69   :  { %v146_v48 = vpop.permute.xlu2 %145 }
  0x75   :  { %v73_v14 = vpop.permute.xlu0 %72  ;;  %v63_v15 = vpop.permute.xlu1 %62 }
  0x7d   :  { %v78_v18 = vpop.permute.xlu0 %77  ;;  %v68_v20 = vpop.permute.xlu1 %67 }
  0x85   :  { %v177_v52 = vpop.permute.xlu0 %176  ;;  %v182_v55 = vpop.permute.xlu1 %181 }
  0x86   :  { %v118_v12 = vpop.f32.mrf.mxu0 }
  0x87   :  { %v119_v22 = vadd.f32 %v118_v12, %v63_v15 }
  0x89   :  { %v128_v27 = vmax.f32 %v119_v22, 0.0 }
  0x8c   :  { %v123_v16 = vpop.f32.mrf.mxu2 }
  0x8d   :  { %v124_v19 = vadd.f32 %v123_v16, %v73_v14 }
  0x8e   :  { %v120_v17 = vpop.f32.mrf.mxu0 }
  0x8f   :  { %v121_v23 = vadd.f32 %v120_v17, %v68_v20  ;;  %v130_v25 = vmax.f32 %v124_v19, 0.0 }
  0x91   :  { %v129_v28 = vmax.f32 %v121_v23, 0.0 }
  0x93   :  { %v134_v30 = vpack.c.bf16 %v129_v28, %v128_v27 }
  0x94   :  { %v125_v21 = vpop.f32.mrf.mxu2 }
  0x95   :  { %v126_v24 = vadd.f32 %v125_v21, %v78_v18 }
  0x97   :  { %v131_v26 = vmax.f32 %v126_v24, 0.0 }
  0x99   :  { %v135_v29 = vpack.c.bf16 %v131_v26, %v130_v25 }
  0x9b   :  { %162 = vmatpush.bf16.msra.mxu1 %v135_v29 }
  0x9f   :  { %163 = vmatpush.bf16.msra.mxu1 %v134_v30 }
  0xa2   :  { %260 = vmatmul.msk.bf16.vlgmr.msra.gmra.mxu1 %vm102_vm0, %v266_v31 }
 0x11f   :  { %v165_v44 = vpop.f32.mrf.mxu1 }
 0x120   :  { %v166_v45 = vadd.f32 %v165_v44, %v141_v42 }
 0x122   :  { %v170_v47 = vmax.f32 %v166_v45, 0.0 }
 0x124   :  { %v184_v53 = vmul.f32 %v177_v52, %v170_v47 }
 0x126   :  { %v186_v58 = vsel %vm42_vm1, %v184_v53, 0.0 }
 0x127   :  { %v167_v50 = vpop.f32.mrf.mxu1 }
 0x128   :  { %v168_v51 = vadd.f32 %v167_v50, %v146_v48 }
 0x12a   :  { %v171_v54 = vmax.f32 %v168_v51, 0.0 }
 0x12c   :  { %v185_v57 = vmul.f32 %v182_v55, %v171_v54 }
 0x12e   :  { %v187_v59 = vsel %vm42_vm1, %v185_v57, 0.0 }
 0x12f   :  { %v188_v61 = vadd.f32 %v187_v59, %v186_v58 }
 0x131   :  { %v189_v62 = vrot.slane %v188_v61, 4 }
 0x133   :  { %v190_v0 = vadd.f32 %v189_v62, %v188_v61 }
 0x135   :  { %v191_v1 = vrot.slane %v190_v0, 2 }
 0x137   :  { %v192_v3 = vadd.f32 %v191_v1, %v190_v0 }
 0x139   :  { %v193_v5 = vrot.slane %v192_v3, 1 }
 0x13b   :  { %v194_v7 = vadd.f32 %v193_v5, %v192_v3 }
 0x13d   :  { %v197_v9 = vadd.f32 %v196_v6, %v194_v7 }
 0x13f   :  { %v200_v10 = vadd.f32 %v199_v8, %v197_v9 }
 0x141   :  { %v261_v11 = vmul.f32 -1.442695, %v200_v10 }
 0x143   :  { %274 = vpow2.f32 %v261_v11 }
 0x149   :  { %v275_v12 = vpop.eup %274 }
 0x14a   :  { %v204_v13 = vadd.f32 1.0, %v275_v12 }
 0x14c   :  { %276 = vrcp.f32 %v204_v13  ;;  %v216_v17 = vand.u32 2147483648, %v204_v13  ;;  %v214_v19 = vand.u32 2147483647, %v204_v13  ;;  %vm210_vm3 = vweird.f32 %v204_v13 }
 0x14e   :  { %v217_v21 = vor.u32 1.1754944e-38, %v216_v17  ;;  %vm215_vm6 = vcmp.eq.f32.partialorder %v214_v19, 8.507059e+37 }
 0x152   :  { %v277_v14 = vpop.eup %276 }
 0x153   :  { %v206_v15 = vmul.f32 %v277_v14, %v204_v13  ;;  %vm211_vm2 = vweird.f32 %v277_v14 }
 0x154   :  { %vm212_vm4 = vmor %vm210_vm3, %vm211_vm2 }
 0x155   :  { %v207_v16 = vsub.f32 1.0, %v206_v15 }
 0x157   :  { %v208_v18 = vmul.f32 %v277_v14, %v207_v16 }
 0x159   :  { %v209_v20 = vadd.f32 %v277_v14, %v208_v18 }
 0x15b   :  { %v213_v22 = vsel %vm212_vm4, %v277_v14, %v209_v20 }
 0x15c   :  { %v218_v23 = vsel %vm215_vm6, %v217_v21, %v213_v22 }
 0x15d   :  { %221 = vst.msk [vmem:[#allocation3] sm:$0x1] %vm220_vm5, %v218_v23 }
 0x15e   :  { %232 = dma.vmem_to_hbm [thread:$0]  %s228_s11, 16, %s230_s13, [#allocation4]  }
 0x15f   :  { %302 = dma.done.wait [#allocation4], 16  }
 0x160   :  { %303 = vsyncadd [#allocation4], 4294967280 }
 0x161   :  { %237 = vsyncpa [#allocation4], 1 }

</bundles_post_ra>
